<compile_context>
chip_gen: v7x
topology: tpu7x:2x2x1
jax: 0.10.0
libtpu: 0.0.40
codegen_flags: <defaults>
</compile_context>

<pallas_src>
import functools

import jax
import jax.numpy as jnp
from jax.experimental import pallas as pl
from jax.experimental.pallas import tpu as pltpu


def _patch_split_kernel(x_ref, g_ref, b_ref, w_ref, o_ref, *, eps, th, w, c):
    """One (batch, row-tile) step.

    x_ref : (1, th*w, c)      input tokens for `th` rows of the HxW grid
    g_ref : (1, c)            LayerNorm weight
    b_ref : (1, c)            LayerNorm bias
    w_ref : (c, 2c)           reduction weight, pre-transposed + column-permuted
    o_ref : (1, th, 2, w, c)  output block; dim 2 is the sub-row i of the 2x
                              upsampled grid, last dim packs (j, c_out).
    """
    x = x_ref[0].astype(jnp.float32)                       # (th*w, c)
    mu = jnp.mean(x, axis=-1, keepdims=True)
    var = jnp.mean((x - mu) ** 2, axis=-1, keepdims=True)  # biased, like nn.LayerNorm
    xn = (x - mu) * jax.lax.rsqrt(var + eps)
    xn = xn * g_ref[0].astype(jnp.float32) + b_ref[0].astype(jnp.float32)

    # Because the weight columns were permuted in the wrapper:
    #   y[:, (2*i + j)*Cout + co] == (xn @ Wr.T)[:, 4*co + 2*i + j]
    y = jnp.dot(xn, w_ref[...].astype(jnp.float32),
                preferred_element_type=jnp.float32)        # (th*w, 2c)
    y = y.reshape(th, w, 2 * c)

    # sub-row i=0 -> channels [0, c); sub-row i=1 -> channels [c, 2c)
    o_ref[0, :, 0, :, :] = y[:, :, :c].astype(o_ref.dtype)
    o_ref[0, :, 1, :, :] = y[:, :, c:].astype(o_ref.dtype)


def _pick_row_tile(H, W, max_tokens=512):
    """Largest divisor TH of H with TH*W <= max_tokens and a layout-friendly block."""
    for th in range(H, 0, -1):
        if H % th != 0:
            continue
        if th * W <= max_tokens and (th == H or (th * W) % 8 == 0):
            return th
    return H


def patch_split_forward(x, H, W, params, *, eps=1e-5):
    """Pallas equivalent of PatchSplit.forward(x, H, W) -> (B, 4*H*W, C//2)."""
    B, L, C = x.shape
    assert L == H * W, "input feature has wrong size"
    assert C % 2 == 0
    Cout = C // 2

    # PyTorch Linear weight Wr: (2C, C), y = xn @ Wr.T.  Fold (a) the transpose
    # and (b) the PixelShuffle channel de-interleave into the weight ONCE here.
    Wr = params["reduction_weight"]                                        # (2C, C)
    w_perm = Wr.reshape(Cout, 4, C).transpose(1, 0, 2).reshape(2 * C, C).T  # (C, 2C)
    w_perm = jnp.asarray(w_perm, x.dtype)

    gamma = params["norm_weight"].reshape(1, C).astype(x.dtype)
    beta = params["norm_bias"].reshape(1, C).astype(x.dtype)

    TH = _pick_row_tile(H, W)
    grid = (B, H // TH)

    kernel = functools.partial(_patch_split_kernel, eps=eps, th=TH, w=W, c=C)
    out5 = pl.pallas_call(
        kernel,
        out_shape=jax.ShapeDtypeStruct((B, H, 2, W, C), x.dtype),
        grid_spec=pltpu.PrefetchScalarGridSpec(
            num_scalar_prefetch=0,
            grid=grid,
            in_specs=[
                pl.BlockSpec((1, TH * W, C), lambda b, t: (b, t, 0)),   # x tokens
                pl.BlockSpec((1, C), lambda b, t: (0, 0)),              # LN gamma
                pl.BlockSpec((1, C), lambda b, t: (0, 0)),              # LN beta
                pl.BlockSpec((C, 2 * C), lambda b, t: (0, 0)),          # weight (resident)
            ],
            out_specs=pl.BlockSpec((1, TH, 2, W, C),
                                   lambda b, t: (b, t, 0, 0, 0)),
        ),
        compiler_params=pltpu.CompilerParams(
            dimension_semantics=("parallel", "parallel")),
    )(x, gamma, beta, w_perm)

    # (B, H, 2, W, C) and (B, 4*H*W, C//2) have identical memory order -> free reshape.
    return out5.reshape(B, 4 * L, Cout)


def patch_split_reference(x, H, W, params, *, eps=1e-5):
    """Pure-JAX re-implementation of the PyTorch module (validation only)."""
    B, L, C = x.shape
    Cout = C // 2
    gamma = params["norm_weight"]
    beta = params["norm_bias"]
    Wr = params["reduction_weight"]

    mu = x.mean(-1, keepdims=True)
    var = ((x - mu) ** 2).mean(-1, keepdims=True)
    xn = (x - mu) / jnp.sqrt(var + eps) * gamma + beta
    y = xn @ Wr.T                                              # (B, L, 2C)
    y = jnp.transpose(y, (0, 2, 1)).reshape(B, 2 * C, H, W)    # (B, 2C, H, W)
    # PixelShuffle(2)
    y = y.reshape(B, Cout, 2, 2, H, W)
    y = jnp.transpose(y, (0, 1, 4, 2, 5, 3)).reshape(B, Cout, 2 * H, 2 * W)
    y = jnp.transpose(y, (0, 2, 3, 1)).reshape(B, 4 * L, Cout)
    return y


if __name__ == "__main__":
    # Small shapes consistent with the module: B=2, H=W=8 (L=64), dim=32.
    B, H, W, C = 2, 8, 8, 32
    L = H * W

    key = jax.random.PRNGKey(0)
    kx, kw, kg, kb = jax.random.split(key, 4)
    x = jax.random.normal(kx, (B, L, C), dtype=jnp.float32)
    params = {
        "reduction_weight": 0.05 * jax.random.normal(kw, (2 * C, C), dtype=jnp.float32),
        "norm_weight": 1.0 + 0.1 * jax.random.normal(kg, (C,), dtype=jnp.float32),
        "norm_bias": 0.1 * jax.random.normal(kb, (C,), dtype=jnp.float32),
    }

    out = patch_split_forward(x, H, W, params)
    out = jax.block_until_ready(out)

    assert out.shape == (B, 4 * L, C // 2) and out.dtype == jnp.float32

    ref = patch_split_reference(x, H, W, params)
    max_err = float(jnp.max(jnp.abs(out - ref)))
    assert jnp.allclose(out, ref, rtol=2e-2, atol=2e-2), max_err

    print("KERNEL_OK")
</pallas_src>

<mosaic_0001>
module attributes {stable_mosaic.version = 11 : i64} {
  func.func @_patch_split_kernel(%arg0: i32, %arg1: i32, %arg2: memref<1x64x32xf32, #tpu.memory_space<vmem>>, %arg3: memref<1x32xf32, #tpu.memory_space<vmem>>, %arg4: memref<1x32xf32, #tpu.memory_space<vmem>>, %arg5: memref<32x64xf32, #tpu.memory_space<vmem>>, %arg6: memref<1x8x2x8x32xf32, #tpu.memory_space<vmem>>) attributes {dimension_semantics = [#tpu.dimension_semantics<parallel>, #tpu.dimension_semantics<parallel>], iteration_bounds = array<i64: 2, 1>, scalar_prefetch = 0 : i64, scratch_operands = 0 : i64, tpu.core_type = #tpu.core_type<tc>, window_params = [{transform_indices = @transform_0, window_bounds = array<i64: 1, 64, 32>}, {pipeline_mode = #tpu.pipeline_mode<synchronous>, transform_indices = @transform_1, window_bounds = array<i64: 1, 32>}, {pipeline_mode = #tpu.pipeline_mode<synchronous>, transform_indices = @transform_2, window_bounds = array<i64: 1, 32>}, {pipeline_mode = #tpu.pipeline_mode<synchronous>, transform_indices = @transform_3, window_bounds = array<i64: 32, 64>}, {transform_indices = @transform_4, window_bounds = array<i64: 1, 8, 2, 8, 32>}]} {
    %c0 = arith.constant 0 : index
    %c0_0 = arith.constant 0 : index
    %c0_1 = arith.constant 0 : index
    %0 = vector.load %arg2[%c0, %c0_0, %c0_1] : memref<1x64x32xf32, #tpu.memory_space<vmem>>, vector<1x64x32xf32>
    %1 = vector.shape_cast %0 : vector<1x64x32xf32> to vector<64x32xf32>
    %cst = arith.constant dense<0.000000e+00> : vector<64xf32>
    %2 = vector.multi_reduction <add>, %1, %cst [1] : vector<64x32xf32> to vector<64xf32>
    %3 = vector.shape_cast %2 : vector<64xf32> to vector<64x1xf32>
    %cst_2 = arith.constant 3.200000e+01 : f32
    %4 = vector.broadcast %cst_2 : f32 to vector<64x1xf32>
    %5 = arith.divf %3, %4 : vector<64x1xf32>
    %6 = vector.broadcast %5 : vector<64x1xf32> to vector<64x32xf32>
    %7 = arith.subf %1, %6 : vector<64x32xf32>
    %8 = arith.mulf %7, %7 : vector<64x32xf32>
    %cst_3 = arith.constant dense<0.000000e+00> : vector<64xf32>
    %9 = vector.multi_reduction <add>, %8, %cst_3 [1] : vector<64x32xf32> to vector<64xf32>
    %10 = vector.shape_cast %9 : vector<64xf32> to vector<64x1xf32>
    %cst_4 = arith.constant 3.200000e+01 : f32
    %11 = vector.broadcast %cst_4 : f32 to vector<64x1xf32>
    %12 = arith.divf %10, %11 : vector<64x1xf32>
    %13 = vector.broadcast %5 : vector<64x1xf32> to vector<64x32xf32>
    %14 = arith.subf %1, %13 : vector<64x32xf32>
    %cst_5 = arith.constant 9.99999974E-6 : f32
    %15 = vector.broadcast %cst_5 : f32 to vector<64x1xf32>
    %16 = arith.addf %12, %15 : vector<64x1xf32>
    %17 = math.rsqrt %16 : vector<64x1xf32>
    %18 = vector.broadcast %17 : vector<64x1xf32> to vector<64x32xf32>
    %19 = arith.mulf %14, %18 : vector<64x32xf32>
    %c0_6 = arith.constant 0 : index
    %c0_7 = arith.constant 0 : index
    %20 = vector.load %arg3[%c0_6, %c0_7] : memref<1x32xf32, #tpu.memory_space<vmem>>, vector<1x32xf32>
    %21 = vector.shape_cast %20 : vector<1x32xf32> to vector<32xf32>
    %22 = vector.shape_cast %21 : vector<32xf32> to vector<1x32xf32>
    %23 = vector.broadcast %22 : vector<1x32xf32> to vector<64x32xf32>
    %24 = arith.mulf %19, %23 : vector<64x32xf32>
    %c0_8 = arith.constant 0 : index
    %c0_9 = arith.constant 0 : index
    %25 = vector.load %arg4[%c0_8, %c0_9] : memref<1x32xf32, #tpu.memory_space<vmem>>, vector<1x32xf32>
    %26 = vector.shape_cast %25 : vector<1x32xf32> to vector<32xf32>
    %27 = vector.shape_cast %26 : vector<32xf32> to vector<1x32xf32>
    %28 = vector.broadcast %27 : vector<1x32xf32> to vector<64x32xf32>
    %29 = arith.addf %24, %28 : vector<64x32xf32>
    %c0_10 = arith.constant 0 : index
    %c0_11 = arith.constant 0 : index
    %30 = vector.load %arg5[%c0_10, %c0_11] : memref<32x64xf32, #tpu.memory_space<vmem>>, vector<32x64xf32>
    %cst_12 = arith.constant dense<0.000000e+00> : vector<64x64xf32>
    %31 = tpu.matmul %29, %30, %cst_12 {dimension_numbers = #tpu.dot_dimension_numbers<[1], [0], [0], [1], [0, 0, 1, 1], [], []>} : vector<64x32xf32>, vector<32x64xf32>, vector<64x64xf32> -> vector<64x64xf32>
    %32 = vector.shape_cast %31 : vector<64x64xf32> to vector<8x8x64xf32>
    %33 = vector.extract_strided_slice %32 {offsets = [0, 0, 0], sizes = [8, 8, 32], strides = [1, 1, 1]} : vector<8x8x64xf32> to vector<8x8x32xf32>
    %c0_13 = arith.constant 0 : index
    %c0_14 = arith.constant 0 : index
    %c0_15 = arith.constant 0 : index
    %c0_16 = arith.constant 0 : index
    %c0_17 = arith.constant 0 : index
    %34 = vector.load %arg6[%c0_13, %c0_14, %c0_15, %c0_16, %c0_17] : memref<1x8x2x8x32xf32, #tpu.memory_space<vmem>>, vector<1x8x1x8x32xf32>
    %35 = vector.shape_cast %34 : vector<1x8x1x8x32xf32> to vector<8x8x32xf32>
    %36 = vector.shape_cast %33 : vector<8x8x32xf32> to vector<1x8x1x8x32xf32>
    tpu.vector_store %arg6[%c0_13, %c0_14, %c0_15, %c0_16, %c0_17], %36 {strides = array<i32>} : memref<1x8x2x8x32xf32, #tpu.memory_space<vmem>>, vector<1x8x1x8x32xf32>,
    %37 = vector.extract_strided_slice %32 {offsets = [0, 0, 32], sizes = [8, 8, 32], strides = [1, 1, 1]} : vector<8x8x64xf32> to vector<8x8x32xf32>
    %c0_18 = arith.constant 0 : index
    %c0_19 = arith.constant 0 : index
    %c1 = arith.constant 1 : index
    %c0_20 = arith.constant 0 : index
    %c0_21 = arith.constant 0 : index
    %38 = vector.load %arg6[%c0_18, %c0_19, %c1, %c0_20, %c0_21] : memref<1x8x2x8x32xf32, #tpu.memory_space<vmem>>, vector<1x8x1x8x32xf32>
    %39 = vector.shape_cast %38 : vector<1x8x1x8x32xf32> to vector<8x8x32xf32>
    %40 = vector.shape_cast %37 : vector<8x8x32xf32> to vector<1x8x1x8x32xf32>
    tpu.vector_store %arg6[%c0_18, %c0_19, %c1, %c0_20, %c0_21], %40 {strides = array<i32>} : memref<1x8x2x8x32xf32, #tpu.memory_space<vmem>>, vector<1x8x1x8x32xf32>,
    return
  }
  func.func @transform_0(%arg0: i32, %arg1: i32) -> (i32, i32, i32) {
    %c0_i32 = arith.constant 0 : i32
    %c0_i32_0 = arith.constant 0 : i32
    return %arg0, %arg1, %c0_i32 : i32, i32, i32
  }
  func.func @transform_1(%arg0: i32, %arg1: i32) -> (i32, i32) {
    %c0_i32 = arith.constant 0 : i32
    %c0_i32_0 = arith.constant 0 : i32
    %c0_i32_1 = arith.constant 0 : i32
    return %c0_i32, %c0_i32_0 : i32, i32
  }
  func.func @transform_2(%arg0: i32, %arg1: i32) -> (i32, i32) {
    %c0_i32 = arith.constant 0 : i32
    %c0_i32_0 = arith.constant 0 : i32
    %c0_i32_1 = arith.constant 0 : i32
    return %c0_i32, %c0_i32_0 : i32, i32
  }
  func.func @transform_3(%arg0: i32, %arg1: i32) -> (i32, i32) {
    %c0_i32 = arith.constant 0 : i32
    %c0_i32_0 = arith.constant 0 : i32
    %c0_i32_1 = arith.constant 0 : i32
    return %c0_i32, %c0_i32_0 : i32, i32
  }
  func.func @transform_4(%arg0: i32, %arg1: i32) -> (i32, i32, i32, i32, i32) {
    %c0_i32 = arith.constant 0 : i32
    %c0_i32_0 = arith.constant 0 : i32
    %c0_i32_1 = arith.constant 0 : i32
    %c0_i32_2 = arith.constant 0 : i32
    return %arg0, %arg1, %c0_i32, %c0_i32_0, %c0_i32_1 : i32, i32, i32, i32, i32
  }
}

</mosaic_0001>

<bundles_post_ra>
// kernel: tpu_custom_call.1
= control target key start
LH: loop header
LB: loop body
LE: loop exit
PB: predicated region body
PF: predicated region fallthrough
CT: control target
= control target key end

     0   :  { %9 = vsyncpa [#allocation3], 0  ;;  %s1145_s0 = inlined_call_operand.vmem [shape: f32[2,64,32], index: 0, kind: input, shape index: {}]   ;;  %s1146_s1 = inlined_call_operand.vmem [shape: f32[1,32], index: 1, kind: input, shape index: {}]   ;;  %s1147_s2 = inlined_call_operand.vmem [shape: f32[1,32], index: 2, kind: input, shape index: {}]   ;;  %s1148_s3 = inlined_call_operand.vmem [shape: f32[32,64], index: 3, kind: input, shape index: {}]   ;;  %s1149_s4 = inlined_call_operand.hbm [shape: f32[2,8,2,8,32], index: 4, kind: output, shape index: {}]  }
   0x1   :  { %11 = vsyncpa [#allocation3 + $0x1], 0  ;;  %s909_s15 = smov 0   ;;  %s911_s16 = smov 0  }
   0x2   :  { %s913_s17 = smov 0   ;;  %s915_s18 = smov 0  }
   0x3   :  { %s917_s19 = smov 0   ;;  %s919_s20 = smov 0  }
   0x4 LB: > { %s649_s21 = sadd.s32 4294967295, %s878_s20   ;;  %s650_s22 = sadd.s32 4294967294, %s878_s20   ;;  %s878_s20 = sphi %s919_s20, %s17_s20   ;;  %s874_s19 = sphi %s917_s19, %s1156_s19   ;;  %s870_s18 = sphi %s915_s18, %s1155_s18   ;;  %s866_s17 = sphi %s913_s17, %s1154_s17   ;;  %s862_s16 = sphi %s911_s16, %s1153_s16   ;;  %s858_s15 = sphi %s909_s15, %s1152_s15  }
   0x5   : > { %s29_s23 = sadd.s32 1, %s874_s19  ;;  %s129_s24 = sadd.s32 1, %s866_s17 }
   0x6   : > { %p31_p0 = scmp.ge.s32.totalorder %s29_s23, 2  ;;  %p139_p1 = scmp.ne.s32.totalorder %s866_s17, %s862_s16 }
   0x7   : > { %p140_p2 = scmp.eq.s32.totalorder %s649_s21, 1  ;;  %p145_p3 = scmp.ne.s32.totalorder %s862_s16, %s858_s15 }
   0x8   : > { %s1158_s23 = smov (%p31_p0, %s29_s23), 0  ;;  %p146_p5 = scmp.eq.s32.totalorder %s650_s22, 1 }
   0x9   : > { %p949_p4 = por %p140_p2, %p139_p1  ;;  %s124_s26 = ssub.s32 %s874_s19, %s1158_s23 }
   0xa   : > { %p653_p6 = scmp.ge.s32.totalorder %s878_s20, 1  ;;  %p127_p7 = scmp.eq.s32.totalorder %s124_s26, 0 }
   0xb   : > { %p956_p8 = por %p146_p5, %p145_p3  ;;  %p186_p9 = scmp.lt.s32.totalorder %s878_s20, 3 }
   0xc   : > { %s962_s28 = scalar_select %p127_p7, %s866_s17, %s129_s24  }
   0xd   : > { %p187_p10 = pnand %p653_p6, %p186_p9 }
   0xe   : > { %p217_p11 = scmp.lt.s32.totalorder (!%p187_p10), %s870_s18, 1  ;;  %vm235_vm0 = vcmask (!%p187_p10), 261120   ;;  %v371_v56 = vld [vmem:[%s1148_s3] sm:$0xff] (!%p187_p10)  ;;  %v372_v57 = vld [vmem:[%s1148_s3 + $0x8] sm:$0xff] (!%p187_p10)  ;;  %v373_v59 = vld [vmem:[%s1148_s3 + $0x10] sm:$0xff] (!%p187_p10)  ;;  %s681_s8 = sshll.u32 (!%p187_p10), %s870_s18, 11 }
   0xf   : > { %190 = sbr.rel (%p187_p10) target bundleno = 703 (0x2bf), region = 36  ;;  %v714_v58 = vpack.c.bf16 (!%p187_p10), %v372_v57, %v371_v56  ;;  %v374_v60 = vld [vmem:[%s1148_s3 + $0x18] sm:$0xff] (!%p187_p10)  ;;  %s1091_s12 = scalar_lea.hbm (!%p187_p10), %s1149_s4, %s681_s8 }
  0x10   : > { %v718_v61 = vpack.c.bf16 (!%p187_p10), %v374_v60, %v373_v59  ;;  %s881_s14 = smov (!%p187_p10), [#allocation2]  }
  0x11   : > { %715 = vmatprep.subr.bf16.mxu0 (!%p187_p10), %v714_v58  ;;  %722 = vmatprep.subr.bf16.mxu1 (!%p187_p10), %v714_v58  ;;  %s804_s21 = sshll.u32 (!%p187_p10), %s881_s14, 4  ;;  %s805_s21 = int_to_ptr.vmem [resolvable:$false] %s804_s21 }
  0x12   : > { %717 = vmatpush3.bf16.msra.mxu0 (!%p187_p10), %v714_v58  ;;  %724 = vmatpush3.bf16.msra.mxu1 (!%p187_p10), %v714_v58  ;;  %s806_s22 = scalar_lea.vmem (!%p187_p10), %s805_s21, 4096 }
  0x13   : > { %719 = vmatprep.subr.bf16.mxu0 (!%p187_p10), %v718_v61  ;;  %723 = vmatprep.subr.bf16.mxu1 (!%p187_p10), %v718_v61 }
  0x16   : > { %s218_s29 = scalar_select %p217_p11, %s870_s18, 1  ;;  %721 = vmatpush3.bf16.msra.mxu0 %v718_v61  ;;  %725 = vmatpush3.bf16.msra.mxu1 %v718_v61 }
  0x18   : > { %s680_s30 = sshll.u32 %s218_s29, 6 }
  0x19   : > { %s224_s7 = scalar_lea.vmem %s1145_s0, %s680_s30  ;;  %s213_s30 = sand.u32 1, %s862_s16  }
  0x1a   : > { %v227_v0 = vld [vmem:[%s224_s7] sm:$0xff]  ;;  %v228_v1 = vld [vmem:[%s224_s7 + $0x8] sm:$0xff]  ;;  %v229_v8 = vld [vmem:[%s224_s7 + $0x10] sm:$0xff]  ;;  %s654_s5 = sshll.u32 %s213_s30, 7  ;;  %s1099_s18 = scalar_lea.sflag [#allocation3], %s213_s30 }
  0x1b   : > { %v231_v2 = vld [vmem:[%s224_s7 + $0x20] sm:$0xff]  ;;  %v236_v3 = vsel %vm235_vm0, %v227_v0, 0.0  ;;  %v239_v4 = vsel %vm235_vm0, %v228_v1, 0.0  ;;  %v232_v5 = vld [vmem:[%s224_s7 + $0x28] sm:$0xff]  ;;  %v233_v9 = vld [vmem:[%s224_s7 + $0x30] sm:$0xff]  ;;  %v242_v10 = vsel %vm235_vm0, %v229_v8, 0.0 }
  0x1c   : > { %237 = vadd.xlane.f32.xlu0 %v236_v3  ;;  %240 = vadd.xlane.f32.xlu1 %v239_v4  ;;  %v248_v6 = vsel %vm235_vm0, %v231_v2, 0.0  ;;  %v251_v7 = vsel %vm235_vm0, %v232_v5, 0.0  ;;  %v254_v11 = vsel %vm235_vm0, %v233_v9, 0.0  ;;  %v230_v12 = vld [vmem:[%s224_s7 + $0x18] sm:$0xff]  ;;  %s1054_s6 = scalar_lea.vmem [#allocation2], %s654_s5 }
  0x1d   : > { %v234_v13 = vld [vmem:[%s224_s7 + $0x38] sm:$0xff]  ;;  %v245_v14 = vsel %vm235_vm0, %v230_v12, 0.0  ;;  %s880_s7 = smov 96   ;;  %s570_s9 = sshll.u32 %s1054_s6, 4  ;;  %s1093_s9 = int_to_ptr.vmem [resolvable:$true] %s570_s9 }
  0x1e   : > { %v257_v15 = vsel %vm235_vm0, %v234_v13, 0.0  ;;  %s800_s13 = scalar_lea.vmem %s1093_s9, 2048  ;;  %p807_p1 = scmp.lt.s32.totalorder %s1093_s9, %s805_s21 }
  0x1f   : > { %p801_p12 = scmp.ne.s32.totalorder %s1093_s9, %s800_s13  ;;  %p808_p2 = scmp.lt.s32.totalorder %s806_s22, %s800_s13 }
  0x20   : > { %249 = vadd.xlane.f32.xlu0 %v248_v6  ;;  %252 = vadd.xlane.f32.xlu1 %v251_v7 }
  0x21   : > { %p802_p13 = pnand %p801_p12, %p949_p4  ;;  %p809_p3 = por %p808_p2, %p807_p1 }
  0x23   : > { %p803_p0 = pneg %p802_p13 }
  0x24   : > { %243 = vadd.xlane.f32.xlu0 %v242_v10  ;;  %255 = vadd.xlane.f32.xlu1 %v254_v11 }
  0x25   : > { %p810_p5 = pnand %p809_p3, %p803_p0 }
  0x28   : > { %246 = vadd.xlane.f32.xlu0 %v245_v14  ;;  %258 = vadd.xlane.f32.xlu1 %v257_v15 }
  0xa9   : > { %v238_v16 = vpop.xlane.xlu0 %237  ;;  %v241_v17 = vpop.xlane.xlu1 %240 }
  0xaa   : > { %v261_v18 = vmul.f32 0.03125, %v238_v16  ;;  %v262_v19 = vmul.f32 0.03125, %v241_v17 }
  0xac   : > { %v977_v20 = vsub.f32 %v227_v0, %v261_v18  ;;  %v979_v21 = vsub.f32 %v228_v1, %v262_v19 }
  0xad   : > { %v250_v22 = vpop.xlane.xlu0 %249  ;;  %v253_v23 = vpop.xlane.xlu1 %252 }
  0xae   : > { %v265_v24 = vmul.f32 0.03125, %v250_v22  ;;  %v266_v25 = vmul.f32 0.03125, %v253_v23  ;;  %v277_v26 = vmul.f32 %v977_v20, %v977_v20  ;;  %v278_v27 = vmul.f32 %v979_v21, %v979_v21  ;;  %v657_v22 = vld [vmem:[%s1146_s1] ss:$0 sm:$0xff] }
  0xb0   : > { %v985_v28 = vsub.f32 %v231_v2, %v265_v24  ;;  %v987_v29 = vsub.f32 %v232_v5, %v266_v25  ;;  %v285_v30 = vsel %vm235_vm0, %v277_v26, 0.0  ;;  %v288_v33 = vsel %vm235_vm0, %v278_v27, 0.0  ;;  %v658_v26 = vld [vmem:[%s1147_s2] ss:$0 sm:$0xff] }
  0xb1   : > { %286 = vadd.xlane.f32.xlu0 %v285_v30  ;;  %v244_v31 = vpop.xlane.xlu0 %243  ;;  %v256_v32 = vpop.xlane.xlu1 %255 }
  0xb2   : > { %v263_v34 = vmul.f32 0.03125, %v244_v31  ;;  %v267_v35 = vmul.f32 0.03125, %v256_v32  ;;  %v281_v36 = vmul.f32 %v985_v28, %v985_v28  ;;  %v282_v37 = vmul.f32 %v987_v29, %v987_v29 }
  0xb4   : > { %v995_v38 = vsub.f32 %v229_v8, %v263_v34  ;;  %v997_v39 = vsub.f32 %v233_v9, %v267_v35  ;;  %v297_v40 = vsel %vm235_vm0, %v281_v36, 0.0  ;;  %v300_v43 = vsel %vm235_vm0, %v282_v37, 0.0 }
  0xb5   : > { %289 = vadd.xlane.f32.xlu0 %v288_v33  ;;  %298 = vadd.xlane.f32.xlu1 %v297_v40  ;;  %v247_v41 = vpop.xlane.xlu0 %246  ;;  %v259_v42 = vpop.xlane.xlu1 %258 }
  0xb6   : > { %v264_v44 = vmul.f32 0.03125, %v247_v41  ;;  %v268_v45 = vmul.f32 0.03125, %v259_v42  ;;  %v279_v46 = vmul.f32 %v995_v38, %v995_v38  ;;  %v283_v47 = vmul.f32 %v997_v39, %v997_v39 }
  0xb8   : > { %v1005_v48 = vsub.f32 %v230_v12, %v264_v44  ;;  %v1007_v49 = vsub.f32 %v234_v13, %v268_v45  ;;  %v291_v50 = vsel %vm235_vm0, %v279_v46, 0.0  ;;  %v303_v51 = vsel %vm235_vm0, %v283_v47, 0.0 }
  0xb9   : > { %301 = vadd.xlane.f32.xlu1 %v300_v43  ;;  %292 = vadd.xlane.f32.xlu0 %v291_v50 }
  0xba   : > { %v280_v52 = vmul.f32 %v1005_v48, %v1005_v48  ;;  %v284_v53 = vmul.f32 %v1007_v49, %v1007_v49 }
  0xbc   : > { %v294_v54 = vsel %vm235_vm0, %v280_v52, 0.0  ;;  %v306_v55 = vsel %vm235_vm0, %v284_v53, 0.0 }
  0xbd   : > { %304 = vadd.xlane.f32.xlu1 %v303_v51  ;;  %295 = vadd.xlane.f32.xlu0 %v294_v54 }
  0xc1   : > { %307 = vadd.xlane.f32.xlu1 %v306_v55 }
 0x13e   : > { %v287_v62 = vpop.xlane.xlu0 %286 }
 0x13f   : > { %v309_v63 = vmul.f32 0.03125, %v287_v62 }
 0x141   : > { %v317_v0 = vadd.f32 1e-05, %v309_v63 }
 0x142   : > { %v299_v1 = vpop.xlane.xlu1 %298  ;;  %v290_v2 = vpop.xlane.xlu0 %289 }
 0x143   : > { %784 = vrsqrt.f32 %v317_v0  ;;  %v313_v3 = vmul.f32 0.03125, %v299_v1  ;;  %v310_v4 = vmul.f32 0.03125, %v290_v2 }
 0x145   : > { %v321_v5 = vadd.f32 1e-05, %v313_v3  ;;  %v318_v6 = vadd.f32 1e-05, %v310_v4 }
 0x146   : > { %v302_v7 = vpop.xlane.xlu1 %301  ;;  %v293_v8 = vpop.xlane.xlu0 %292 }
 0x147   : > { %786 = vrsqrt.f32 %v321_v5  ;;  %v314_v9 = vmul.f32 0.03125, %v302_v7  ;;  %v311_v10 = vmul.f32 0.03125, %v293_v8 }
 0x148   : > { %788 = vrsqrt.f32 %v318_v6 }
 0x149   : > { %v322_v11 = vadd.f32 1e-05, %v314_v9  ;;  %v319_v12 = vadd.f32 1e-05, %v311_v10 }
 0x14a   : > { %v305_v13 = vpop.xlane.xlu1 %304  ;;  %v296_v14 = vpop.xlane.xlu0 %295 }
 0x14b   : > { %790 = vrsqrt.f32 %v322_v11  ;;  %v315_v15 = vmul.f32 0.03125, %v305_v13  ;;  %v312_v16 = vmul.f32 0.03125, %v296_v14 }
 0x14c   : > { %792 = vrsqrt.f32 %v319_v12 }
 0x14d   : > { %v785_v17 = vpop.eup %784  ;;  %v323_v18 = vadd.f32 1e-05, %v315_v15  ;;  %v320_v19 = vadd.f32 1e-05, %v312_v16 }
 0x14e   : > { %v308_v23 = vpop.xlane.xlu1 %307  ;;  %v333_v24 = vmul.f32 %v785_v17, %v977_v20 }
 0x14f   : > { %794 = vrsqrt.f32 %v323_v18  ;;  %v316_v25 = vmul.f32 0.03125, %v308_v23 }
 0x150   : > { %796 = vrsqrt.f32 %v320_v19  ;;  %v348_v27 = vmul.f32 %v657_v22, %v333_v24 }
 0x151   : > { %v787_v30 = vpop.eup %786  ;;  %v324_v31 = vadd.f32 1e-05, %v316_v25 }
 0x152   : > { %v789_v32 = vpop.eup %788  ;;  %v363_v33 = vadd.f32 %v658_v26, %v348_v27  ;;  %v337_v34 = vmul.f32 %v787_v30, %v985_v28 }
 0x153   : > { %798 = vrsqrt.f32 %v324_v31  ;;  %v334_v35 = vmul.f32 %v789_v32, %v979_v21 }
 0x154   : > { %702 = vmatprep.mubr.msk.f32.mxu0 %vm235_vm0, %v363_v33  ;;  %v352_v20 = vmul.f32 %v657_v22, %v337_v34 }
 0x155   : > { %v791_v36 = vpop.eup %790  ;;  %v349_v37 = vmul.f32 %v657_v22, %v334_v35 }
 0x156   : > { %v793_v40 = vpop.eup %792  ;;  %v367_v41 = vadd.f32 %v658_v26, %v352_v20  ;;  %v338_v42 = vmul.f32 %v791_v36, %v987_v29 }
 0x157   : > { %v364_v43 = vadd.f32 %v658_v26, %v349_v37  ;;  %v335_v44 = vmul.f32 %v793_v40, %v995_v38 }
 0x158   : > { %708 = vmatprep.mubr.msk.f32.mxu1 %vm235_vm0, %v367_v41  ;;  %v353_v45 = vmul.f32 %v657_v22, %v338_v42 }
 0x159   : > { %v795_v46 = vpop.eup %794  ;;  %703 = vmatmul.mubr.msk.f32.vlgmr.msra.gmra.mrb[0].mxu0 %vm235_vm0, %v364_v43  ;;  %v350_v28 = vmul.f32 %v657_v22, %v335_v44 }
 0x15a   : > { %v797_v21 = vpop.eup %796  ;;  %v368_v47 = vadd.f32 %v658_v26, %v353_v45  ;;  %v339_v50 = vmul.f32 %v795_v46, %v997_v39 }
 0x15b   : > { %v365_v51 = vadd.f32 %v658_v26, %v350_v28  ;;  %v336_v52 = vmul.f32 %v797_v21, %v1005_v48 }
 0x15c   : > { %709 = vmatmul.mubr.msk.f32.vlgmr.msra.gmra.mrb[0].mxu1 %vm235_vm0, %v368_v47  ;;  %v354_v29 = vmul.f32 %v657_v22, %v339_v50 }
 0x15d   : > { %v799_v38 = vpop.eup %798  ;;  %705 = vmatprep.mubr.msk.f32.mxu0 %vm235_vm0, %v365_v51  ;;  %v351_v53 = vmul.f32 %v657_v22, %v336_v52 }
 0x15e   : > { %v369_v54 = vadd.f32 %v658_v26, %v354_v29  ;;  %v340_v55 = vmul.f32 %v799_v38, %v1007_v49 }
 0x15f   : > { %v366_v56 = vadd.f32 %v658_v26, %v351_v53 }
 0x160   : > { %711 = vmatprep.mubr.msk.f32.mxu1 %vm235_vm0, %v369_v54  ;;  %v355_v57 = vmul.f32 %v657_v22, %v340_v55 }
 0x161   : > { %706 = vmatmul.mubr.msk.f32.gmra.mrb[2].mxu0 %vm235_vm0, %v366_v56 }
 0x162   : > { %v370_v39 = vadd.f32 %v658_v26, %v355_v57 }
 0x164   : > { %712 = vmatmul.mubr.msk.f32.gmra.mrb[2].mxu1 %vm235_vm0, %v370_v39 }
 0x22c   : > { %v704_v48 = vpop.f32.mrb[0].mxu0 }
 0x22d   : > { %505 = vst.msk [vmem:[%s1054_s6 + $0x10] sm:$0xff] %vm235_vm0, %v704_v48  ;;  %522 = vrot.lane.b32.xlu1 %v704_v48, %s880_s7  ;;  %v465_v49 = vpop.f32.mrb[1].mxu0 }
 0x22e   : > { %504 = vst.msk [vmem:[%s1054_s6] sm:$0xff] %vm235_vm0, %v465_v49  ;;  %520 = vrot.lane.b32.xlu0 %v465_v49, %s880_s7 }
 0x22f   : > { %v710_v58 = vpop.f32.mrb[0].mxu1 }
 0x230   : > { %509 = vst.msk [vmem:[%s1054_s6 + $0x50] sm:$0xff] %vm235_vm0, %v710_v58  ;;  %v485_v59 = vpop.f32.mrb[1].mxu1 }
 0x231   : > { %508 = vst.msk [vmem:[%s1054_s6 + $0x40] sm:$0xff] %vm235_vm0, %v485_v59  ;;  %530 = vrot.lane.b32.xlu1 %v710_v58, %s880_s7 }
 0x232   : > { %528 = vrot.lane.b32.xlu0 %v485_v59, %s880_s7 }
 0x234   : > { %v707_v60 = vpop.f32.mrb[2].mxu0 }
 0x235   : > { %507 = vst.msk [vmem:[%s1054_s6 + $0x30] sm:$0xff] %vm235_vm0, %v707_v60  ;;  %526 = vrot.lane.b32.xlu1 %v707_v60, %s880_s7  ;;  %v475_v61 = vpop.f32.mrb[3].mxu0 }
 0x236   : > { %506 = vst.msk [vmem:[%s1054_s6 + $0x20] sm:$0xff] %vm235_vm0, %v475_v61 }
 0x237   : > { %v713_v62 = vpop.f32.mrb[2].mxu1 }
 0x238   : > { %511 = vst.msk [vmem:[%s1054_s6 + $0x70] sm:$0xff] %vm235_vm0, %v713_v62  ;;  %v495_v63 = vpop.f32.mrb[3].mxu1 }
 0x239   : > { %510 = vst.msk [vmem:[%s1054_s6 + $0x60] sm:$0xff] %vm235_vm0, %v495_v63  ;;  %524 = vrot.lane.b32.xlu1 %v475_v61, %s880_s7  ;;  %532 = vrot.lane.b32.xlu0 %v495_v63, %s880_s7 }
 0x23d   : > { %534 = vrot.lane.b32.xlu1 %v713_v62, %s880_s7 }
 0x29f   : > { %v523_v0 = vpop.permute.xlu1 %522 }
 0x2a0   : > { %668 = vst.msk [vmem:[%s1054_s6 + $0x18] sm:$0xff] %vm235_vm0, %v523_v0  ;;  %v521_v1 = vpop.permute.xlu0 %520 }
 0x2a1   : > { %667 = vst.msk [vmem:[%s1054_s6 + $0x8] sm:$0xff] %vm235_vm0, %v521_v1 }
 0x2a3   : > { %v531_v2 = vpop.permute.xlu1 %530 }
 0x2a4   : > { %672 = vst.msk [vmem:[%s1054_s6 + $0x58] sm:$0xff] %vm235_vm0, %v531_v2  ;;  %v529_v3 = vpop.permute.xlu0 %528 }
 0x2a5   : > { %671 = vst.msk [vmem:[%s1054_s6 + $0x48] sm:$0xff] %vm235_vm0, %v529_v3 }
 0x2a7   : > { %v527_v4 = vpop.permute.xlu1 %526 }
 0x2a8   : > { %670 = vst.msk [vmem:[%s1054_s6 + $0x38] sm:$0xff] %vm235_vm0, %v527_v4 }
 0x2ab   : > { %v525_v5 = vpop.permute.xlu1 %524  ;;  %v533_v6 = vpop.permute.xlu0 %532 }
 0x2ac   : > { %669 = vst.msk [vmem:[%s1054_s6 + $0x28] sm:$0xff] %vm235_vm0, %v525_v5  ;;  %673 = vst.msk [vmem:[%s1054_s6 + $0x68] sm:$0xff] %vm235_vm0, %v533_v6 }
 0x2af   : > { %v535_v7 = vpop.permute.xlu1 %534 }
 0x2b0   : > { %674 = vst.msk [vmem:[%s1054_s6 + $0x78] sm:$0xff] %vm235_vm0, %v535_v7 }
 0x2b1   : > { %813 = shalt.err (!%p810_p5)
}
 0x2b2   : > { %s814_s24 = scalar_lea.hbm %s1091_s12, 2048  ;;  %s818_s30 = scalar_lea.hbm %s1149_s4, 4096 }
 0x2b3   : > { %p815_p6 = scmp.ne.s32.totalorder %s1091_s12, %s814_s24  ;;  %p819_p10 = scmp.lt.u32.totalorder %s1091_s12, %s1149_s4 }
 0x2b4   : > { %p820_p11 = scmp.lt.u32.totalorder %s818_s30, %s814_s24  ;;  %p822_p13 = scmp.lt.u32.totalorder %s814_s24, %s1091_s12 }
 0x2b5   : > { %p816_p7 = pnand %p815_p6, %p949_p4 }
 0x2b6   : > { %p821_p12 = por %p820_p11, %p819_p10 }
 0x2b7   : > { %p817_p9 = pneg %p816_p7 }
 0x2b8   : > { %p823_p0 = por %p822_p13, %p821_p12 }
 0x2ba   : > { %p824_p1 = pnand %p823_p0, %p817_p9 }
 0x2bc   : > { %827 = shalt.err (!%p824_p1)
}
 0x2bd   : > { %s882_s7 = smov 128   ;;  %s883_s8 = smov 8  }
 0x2be   : > { %726 = dma.vmem_to_hbm [thread:$0]  (%p949_p4), %s1093_s9, 2048, %s1091_s12, %s1099_s18, %s882_s7, %s882_s7, %s883_s8  }
 0x2bf PF: > { %p732_p2 = scmp.ge.s32.totalorder %s878_s20, 2  ;;  %s585_s10 = sand.u32 1, %s858_s15  }
 0x2c0   : > { %s586_s11 = scalar_lea.sflag [#allocation3], %s585_s10 }
 0x2c1   : > { %p729_p3 = pnand %p732_p2, %p956_p8 }
 0x2c3   : > { %853 = dma.done.wait (!%p729_p3), %s586_s11, 2048  }
 0x2c4   : > { %855 = vsyncadd (!%p729_p3), %s586_s11, 4294965248  ;;  %s17_s20 = sadd.s32 1, %s878_s20   ;;  %s1152_s15 = smov %s862_s16 }
 0x2c5   : > { %p14_p5 = scmp.ge.s32.totalorder %s17_s20, 4   ;;  %s1153_s16 = smov %s866_s17 }
 0x2c6   : > { %s1154_s17 = smov %s962_s28  ;;  %s1155_s18 = smov %s874_s19 }
 0x2c7   : > { %s1156_s19 = smov %s1158_s23  ;;  %16 = sbr.rel (!%p14_p5) target bundleno = 4 (0x4), region = 72 }
 0x2ce   :  { %591 = vsyncpa [#allocation3], 1 }
 0x2cf   :  { %593 = vsyncpa [#allocation3 + $0x1], 1 }

</bundles_post_ra>
